<compile_context>
chip_gen: v6e
topology: v6e:2x2x1
jax: 0.10.0
libtpu: 0.0.40
codegen_flags: <defaults>
</compile_context>

<pallas_src>
import functools

import jax
import jax.numpy as jnp
import numpy as np
from jax.experimental import pallas as pl
from jax.experimental.pallas import tpu as pltpu  # noqa: F401  (kept for TPU backend)

NEG_SLOPE = 0.2  # args.negative_slope


# ------------------------- in-kernel GAT layer math --------------------------
def _gat_layer_compute(x, adj_mask, w_all, al, ar, b, *, heads, dout,
                       negative_slope, apply_act):
    """One GAT layer for all heads; returns the (N, heads*dout) head concat."""
    # All-heads projection in one MXU matmul: (N, Din) @ (Din, heads*Dout).
    feat_all = jnp.dot(x, w_all, preferred_element_type=jnp.float32)
    outs = []
    for hh in range(heads):  # unrolled at trace time (heads is tiny)
        feat = feat_all[:, hh * dout:(hh + 1) * dout]                    # (N, Dout)
        el = jnp.sum(feat * al[hh:hh + 1, :], axis=-1, keepdims=True)    # (N, 1) src
        er = jnp.sum(feat * ar[hh:hh + 1, :], axis=-1, keepdims=True)    # (N, 1) dst
        e = er + jnp.transpose(el)                                       # e[dst, src]
        e = jnp.where(e > 0, e, negative_slope * e)                      # LeakyReLU
        masked = jnp.where(adj_mask, e, -1e30)
        m = jnp.max(masked, axis=-1, keepdims=True)        # finite: self-loops present
        p = jnp.exp(masked - m)                            # masked entries underflow to 0
        alpha = p / jnp.sum(p, axis=-1, keepdims=True)     # edge softmax over src
        r = (jnp.dot(alpha, feat, preferred_element_type=jnp.float32)
             + b[hh:hh + 1, :])
        if apply_act:
            r = jnp.maximum(r, 0.0)
        outs.append(r)
    return outs[0] if heads == 1 else jnp.concatenate(outs, axis=-1)


# ----------------------------- fused forward kernel --------------------------
def fused_forward_kernel(h5_ref, sc_ref, adj_ref,
                         w_h5_ref, b_h5_ref, w_sc_ref, b_sc_ref,
                         w_f_a_ref, w_f_b_ref, b_f_ref,
                         w1_ref, al1_ref, ar1_ref, b1_ref,
                         w2_ref, al2_ref, ar2_ref, b2_ref,
                         out_ref,
                         *, nhead1, dout1, nhead2, dout2, negative_slope):
    # --- FusionEncoder: per-modality Linear+ReLU -> concat -> Linear+ReLU ----
    h5p = jnp.maximum(
        jnp.dot(h5_ref[...], w_h5_ref[...], preferred_element_type=jnp.float32)
        + b_h5_ref[...], 0.0)
    scp = jnp.maximum(
        jnp.dot(sc_ref[...], w_sc_ref[...], preferred_element_type=jnp.float32)
        + b_sc_ref[...], 0.0)
    # concat([h5p, scp], -1) @ W_f  ==  h5p @ W_f[:H] + scp @ W_f[H:]
    h = jnp.maximum(
        jnp.dot(h5p, w_f_a_ref[...], preferred_element_type=jnp.float32)
        + jnp.dot(scp, w_f_b_ref[...], preferred_element_type=jnp.float32)
        + b_f_ref[...], 0.0)

    adj_mask = adj_ref[...] > 0

    # --- GAT layer 1 (hidden, ReLU) ------------------------------------------
    h = _gat_layer_compute(h, adj_mask, w1_ref[...], al1_ref[...], ar1_ref[...],
                           b1_ref[...], heads=nhead1, dout=dout1,
                           negative_slope=negative_slope, apply_act=True)
    # --- GAT layer 2 (output, no activation) ---------------------------------
    h = _gat_layer_compute(h, adj_mask, w2_ref[...], al2_ref[...], ar2_ref[...],
                           b2_ref[...], heads=nhead2, dout=dout2,
                           negative_slope=negative_slope, apply_act=False)

    out_ref[...] = h


def supervised_fusion_forward(adj, h5_features, sc_features, packed):
    n = h5_features.shape[0]
    nhead1, dout1 = packed["gat1_shape"]
    nhead2, dout2 = packed["gat2_shape"]
    kernel = functools.partial(fused_forward_kernel,
                               nhead1=nhead1, dout1=dout1,
                               nhead2=nhead2, dout2=dout2,
                               negative_slope=NEG_SLOPE)
    # Everything fits comfortably in VMEM at this size -> single call, no grid.
    return pl.pallas_call(
        kernel,
        out_shape=jax.ShapeDtypeStruct((n, nhead2 * dout2), jnp.float32),
    )(h5_features, sc_features, adj,
      packed["w_h5"], packed["b_h5"], packed["w_sc"], packed["b_sc"],
      packed["w_f_a"], packed["w_f_b"], packed["b_f"],
      packed["w1"], packed["al1"], packed["ar1"], packed["b1"],
      packed["w2"], packed["al2"], packed["ar2"], packed["b2"])


# ------------------------------ params / packing -----------------------------
def init_params(key, *, h5_dim, sc_dim, hidden, fused_out,
                num_hidden, num_classes, nhead, nhead_out):
    keys = jax.random.split(key, 8)

    def lin(k, din, dout):
        return jax.random.normal(k, (din, dout), jnp.float32) / jnp.sqrt(din)

    fusion = dict(
        w_h5=lin(keys[0], h5_dim, hidden),
        b_h5=jnp.zeros((1, hidden), jnp.float32),
        w_sc=lin(keys[1], sc_dim, hidden),
        b_sc=jnp.zeros((1, hidden), jnp.float32),
        w_f_a=lin(keys[2], hidden, fused_out),
        w_f_b=lin(keys[3], hidden, fused_out),
        b_f=jnp.zeros((1, fused_out), jnp.float32),
    )

    def gat_params(k, din, dout, heads):
        k1, k2, k3 = jax.random.split(k, 3)
        return dict(
            w=jax.random.normal(k1, (heads, din, dout), jnp.float32) / jnp.sqrt(din),
            al=0.1 * jax.random.normal(k2, (heads, 1, dout), jnp.float32),
            ar=0.1 * jax.random.normal(k3, (heads, 1, dout), jnp.float32),
            b=jnp.zeros((heads, 1, dout), jnp.float32),
        )

    gat = [
        gat_params(keys[4], fused_out, num_hidden, nhead),
        gat_params(keys[5], num_hidden * nhead, num_classes, nhead_out),
    ]
    return dict(fusion=fusion, gat=gat)


def pack_params(params):
    """One-time host-side packing: per-head weights -> (Din, heads*Dout) slabs."""
    fp = params["fusion"]
    packed = dict(w_h5=fp["w_h5"], b_h5=fp["b_h5"], w_sc=fp["w_sc"],
                  b_sc=fp["b_sc"], w_f_a=fp["w_f_a"], w_f_b=fp["w_f_b"],
                  b_f=fp["b_f"])
    for i, lp in enumerate(params["gat"], start=1):
        heads, din, dout = lp["w"].shape
        packed[f"w{i}"] = jnp.transpose(lp["w"], (1, 0, 2)).reshape(din, heads * dout)
        packed[f"al{i}"] = lp["al"].reshape(heads, dout)
        packed[f"ar{i}"] = lp["ar"].reshape(heads, dout)
        packed[f"b{i}"] = lp["b"].reshape(heads, dout)
        packed[f"gat{i}_shape"] = (heads, dout)
    return packed


# ------------------------------- pure-JAX reference --------------------------
def reference_forward(adj, h5, sc, params):
    fp = params["fusion"]
    h5p = jnp.maximum(h5 @ fp["w_h5"] + fp["b_h5"], 0.0)
    scp = jnp.maximum(sc @ fp["w_sc"] + fp["b_sc"], 0.0)
    h = jnp.maximum(h5p @ fp["w_f_a"] + scp @ fp["w_f_b"] + fp["b_f"], 0.0)
    n_layers = len(params["gat"])
    for i, lp in enumerate(params["gat"]):
        heads = lp["w"].shape[0]
        outs = []
        for hh in range(heads):
            feat = h @ lp["w"][hh]
            el = jnp.sum(feat * lp["al"][hh], axis=-1, keepdims=True)
            er = jnp.sum(feat * lp["ar"][hh], axis=-1, keepdims=True)
            e = er + el.T
            e = jnp.where(e > 0, e, NEG_SLOPE * e)
            masked = jnp.where(adj > 0, e, -1e30)
            p = jnp.where(adj > 0,
                          jnp.exp(masked - masked.max(-1, keepdims=True)), 0.0)
            alpha = p / p.sum(-1, keepdims=True)
            r = alpha @ feat + lp["b"][hh]
            if i < n_layers - 1:
                r = jnp.maximum(r, 0.0)
            outs.append(r)
        h = jnp.concatenate(outs, axis=-1)
    return h


if __name__ == "__main__":
    N = 16                 # number of graph nodes
    H5_DIM = 32            # args.h5_feature_dim
    SC_DIM = 16            # args.vae_latent_dim
    HIDDEN = 32            # args.fusion_hidden_dim
    FUSED_OUT = 32         # args.fusion_out_dim
    NUM_HIDDEN = 32        # args.num_hidden
    NUM_CLASSES = 8
    NHEAD = 2              # args.num_heads
    NHEAD_OUT = 1          # args.num_out_heads

    key = jax.random.PRNGKey(0)
    k_p, k_h5, k_sc, k_adj = jax.random.split(key, 4)

    params = init_params(k_p, h5_dim=H5_DIM, sc_dim=SC_DIM, hidden=HIDDEN,
                         fused_out=FUSED_OUT, num_hidden=NUM_HIDDEN,
                         num_classes=NUM_CLASSES, nhead=NHEAD,
                         nhead_out=NHEAD_OUT)
    packed = pack_params(params)

    h5_features = jax.random.normal(k_h5, (N, H5_DIM), jnp.float32)
    sc_features = jax.random.normal(k_sc, (N, SC_DIM), jnp.float32)
    adj = (jax.random.uniform(k_adj, (N, N)) < 0.2).astype(jnp.float32)
    adj = jnp.maximum(adj, jnp.eye(N, dtype=jnp.float32))  # self-loops (required)

    out = supervised_fusion_forward(adj, h5_features, sc_features, packed)
    out = jax.block_until_ready(out)
    assert out.shape == (N, NHEAD_OUT * NUM_CLASSES)

    ref = reference_forward(adj, h5_features, sc_features, params)
    np.testing.assert_allclose(np.asarray(out), np.asarray(ref),
                               rtol=1e-4, atol=1e-4)
    print("KERNEL_OK")
</pallas_src>

<mosaic_0001>
module attributes {stable_mosaic.version = 11 : i64} {
  func.func @fused_forward_kernel(%arg0: memref<16x32xf32, #tpu.memory_space<vmem>>, %arg1: memref<16x16xf32, #tpu.memory_space<vmem>>, %arg2: memref<16x16xf32, #tpu.memory_space<vmem>>, %arg3: memref<32x32xf32, #tpu.memory_space<vmem>>, %arg4: memref<1x32xf32, #tpu.memory_space<vmem>>, %arg5: memref<16x32xf32, #tpu.memory_space<vmem>>, %arg6: memref<1x32xf32, #tpu.memory_space<vmem>>, %arg7: memref<32x32xf32, #tpu.memory_space<vmem>>, %arg8: memref<32x32xf32, #tpu.memory_space<vmem>>, %arg9: memref<1x32xf32, #tpu.memory_space<vmem>>, %arg10: memref<32x64xf32, #tpu.memory_space<vmem>>, %arg11: memref<2x32xf32, #tpu.memory_space<vmem>>, %arg12: memref<2x32xf32, #tpu.memory_space<vmem>>, %arg13: memref<2x32xf32, #tpu.memory_space<vmem>>, %arg14: memref<64x8xf32, #tpu.memory_space<vmem>>, %arg15: memref<1x8xf32, #tpu.memory_space<vmem>>, %arg16: memref<1x8xf32, #tpu.memory_space<vmem>>, %arg17: memref<1x8xf32, #tpu.memory_space<vmem>>, %arg18: memref<16x8xf32, #tpu.memory_space<vmem>>) attributes {dimension_semantics = [], scalar_prefetch = 0 : i64, scratch_operands = 0 : i64, tpu.core_type = #tpu.core_type<tc>} {
    %c0 = arith.constant 0 : index
    %c0_0 = arith.constant 0 : index
    %0 = vector.load %arg0[%c0, %c0_0] : memref<16x32xf32, #tpu.memory_space<vmem>>, vector<16x32xf32>
    %c0_1 = arith.constant 0 : index
    %c0_2 = arith.constant 0 : index
    %1 = vector.load %arg3[%c0_1, %c0_2] : memref<32x32xf32, #tpu.memory_space<vmem>>, vector<32x32xf32>
    %cst = arith.constant dense<0.000000e+00> : vector<16x32xf32>
    %2 = tpu.matmul %0, %1, %cst {dimension_numbers = #tpu.dot_dimension_numbers<[1], [0], [0], [1], [0, 0, 1, 1], [], []>} : vector<16x32xf32>, vector<32x32xf32>, vector<16x32xf32> -> vector<16x32xf32>
    %c0_3 = arith.constant 0 : index
    %c0_4 = arith.constant 0 : index
    %3 = vector.load %arg4[%c0_3, %c0_4] : memref<1x32xf32, #tpu.memory_space<vmem>>, vector<1x32xf32>
    %4 = vector.broadcast %3 : vector<1x32xf32> to vector<16x32xf32>
    %5 = arith.addf %2, %4 : vector<16x32xf32>
    %cst_5 = arith.constant 0.000000e+00 : f32
    %6 = vector.broadcast %cst_5 : f32 to vector<16x32xf32>
    %7 = arith.maximumf %5, %6 : vector<16x32xf32>
    %c0_6 = arith.constant 0 : index
    %c0_7 = arith.constant 0 : index
    %8 = vector.load %arg1[%c0_6, %c0_7] : memref<16x16xf32, #tpu.memory_space<vmem>>, vector<16x16xf32>
    %c0_8 = arith.constant 0 : index
    %c0_9 = arith.constant 0 : index
    %9 = vector.load %arg5[%c0_8, %c0_9] : memref<16x32xf32, #tpu.memory_space<vmem>>, vector<16x32xf32>
    %cst_10 = arith.constant dense<0.000000e+00> : vector<16x32xf32>
    %10 = tpu.matmul %8, %9, %cst_10 {dimension_numbers = #tpu.dot_dimension_numbers<[1], [0], [0], [1], [0, 0, 1, 1], [], []>} : vector<16x16xf32>, vector<16x32xf32>, vector<16x32xf32> -> vector<16x32xf32>
    %c0_11 = arith.constant 0 : index
    %c0_12 = arith.constant 0 : index
    %11 = vector.load %arg6[%c0_11, %c0_12] : memref<1x32xf32, #tpu.memory_space<vmem>>, vector<1x32xf32>
    %12 = vector.broadcast %11 : vector<1x32xf32> to vector<16x32xf32>
    %13 = arith.addf %10, %12 : vector<16x32xf32>
    %cst_13 = arith.constant 0.000000e+00 : f32
    %14 = vector.broadcast %cst_13 : f32 to vector<16x32xf32>
    %15 = arith.maximumf %13, %14 : vector<16x32xf32>
    %c0_14 = arith.constant 0 : index
    %c0_15 = arith.constant 0 : index
    %16 = vector.load %arg7[%c0_14, %c0_15] : memref<32x32xf32, #tpu.memory_space<vmem>>, vector<32x32xf32>
    %cst_16 = arith.constant dense<0.000000e+00> : vector<16x32xf32>
    %17 = tpu.matmul %7, %16, %cst_16 {dimension_numbers = #tpu.dot_dimension_numbers<[1], [0], [0], [1], [0, 0, 1, 1], [], []>} : vector<16x32xf32>, vector<32x32xf32>, vector<16x32xf32> -> vector<16x32xf32>
    %c0_17 = arith.constant 0 : index
    %c0_18 = arith.constant 0 : index
    %18 = vector.load %arg8[%c0_17, %c0_18] : memref<32x32xf32, #tpu.memory_space<vmem>>, vector<32x32xf32>
    %cst_19 = arith.constant dense<0.000000e+00> : vector<16x32xf32>
    %19 = tpu.matmul %15, %18, %cst_19 {dimension_numbers = #tpu.dot_dimension_numbers<[1], [0], [0], [1], [0, 0, 1, 1], [], []>} : vector<16x32xf32>, vector<32x32xf32>, vector<16x32xf32> -> vector<16x32xf32>
    %20 = arith.addf %17, %19 : vector<16x32xf32>
    %c0_20 = arith.constant 0 : index
    %c0_21 = arith.constant 0 : index
    %21 = vector.load %arg9[%c0_20, %c0_21] : memref<1x32xf32, #tpu.memory_space<vmem>>, vector<1x32xf32>
    %22 = vector.broadcast %21 : vector<1x32xf32> to vector<16x32xf32>
    %23 = arith.addf %20, %22 : vector<16x32xf32>
    %cst_22 = arith.constant 0.000000e+00 : f32
    %24 = vector.broadcast %cst_22 : f32 to vector<16x32xf32>
    %25 = arith.maximumf %23, %24 : vector<16x32xf32>
    %c0_23 = arith.constant 0 : index
    %c0_24 = arith.constant 0 : index
    %26 = vector.load %arg2[%c0_23, %c0_24] : memref<16x16xf32, #tpu.memory_space<vmem>>, vector<16x16xf32>
    %cst_25 = arith.constant 0.000000e+00 : f32
    %27 = vector.broadcast %cst_25 : f32 to vector<16x16xf32>
    %28 = arith.cmpf ogt, %26, %27 : vector<16x16xf32>
    %c0_26 = arith.constant 0 : index
    %c0_27 = arith.constant 0 : index
    %29 = vector.load %arg10[%c0_26, %c0_27] : memref<32x64xf32, #tpu.memory_space<vmem>>, vector<32x64xf32>
    %c0_28 = arith.constant 0 : index
    %c0_29 = arith.constant 0 : index
    %30 = vector.load %arg11[%c0_28, %c0_29] : memref<2x32xf32, #tpu.memory_space<vmem>>, vector<2x32xf32>
    %c0_30 = arith.constant 0 : index
    %c0_31 = arith.constant 0 : index
    %31 = vector.load %arg12[%c0_30, %c0_31] : memref<2x32xf32, #tpu.memory_space<vmem>>, vector<2x32xf32>
    %c0_32 = arith.constant 0 : index
    %c0_33 = arith.constant 0 : index
    %32 = vector.load %arg13[%c0_32, %c0_33] : memref<2x32xf32, #tpu.memory_space<vmem>>, vector<2x32xf32>
    %cst_34 = arith.constant dense<0.000000e+00> : vector<16x64xf32>
    %33 = tpu.matmul %25, %29, %cst_34 {dimension_numbers = #tpu.dot_dimension_numbers<[1], [0], [0], [1], [0, 0, 1, 1], [], []>} : vector<16x32xf32>, vector<32x64xf32>, vector<16x64xf32> -> vector<16x64xf32>
    %34 = vector.extract_strided_slice %33 {offsets = [0, 0], sizes = [16, 32], strides = [1, 1]} : vector<16x64xf32> to vector<16x32xf32>
    %35 = vector.extract_strided_slice %30 {offsets = [0, 0], sizes = [1, 32], strides = [1, 1]} : vector<2x32xf32> to vector<1x32xf32>
    %36 = vector.broadcast %35 : vector<1x32xf32> to vector<16x32xf32>
    %37 = arith.mulf %34, %36 : vector<16x32xf32>
    %cst_35 = arith.constant dense<0.000000e+00> : vector<16xf32>
    %38 = vector.multi_reduction <add>, %37, %cst_35 [1] : vector<16x32xf32> to vector<16xf32>
    %39 = vector.shape_cast %38 : vector<16xf32> to vector<16x1xf32>
    %40 = vector.extract_strided_slice %31 {offsets = [0, 0], sizes = [1, 32], strides = [1, 1]} : vector<2x32xf32> to vector<1x32xf32>
    %41 = vector.broadcast %40 : vector<1x32xf32> to vector<16x32xf32>
    %42 = arith.mulf %34, %41 : vector<16x32xf32>
    %cst_36 = arith.constant dense<0.000000e+00> : vector<16xf32>
    %43 = vector.multi_reduction <add>, %42, %cst_36 [1] : vector<16x32xf32> to vector<16xf32>
    %44 = vector.shape_cast %43 : vector<16xf32> to vector<16x1xf32>
    %45 = tpu.transpose %39, [1, 0] : vector<16x1xf32> -> vector<1x16xf32>
    %46 = vector.broadcast %44 : vector<16x1xf32> to vector<16x16xf32>
    %47 = vector.broadcast %45 : vector<1x16xf32> to vector<16x16xf32>
    %48 = arith.addf %46, %47 : vector<16x16xf32>
    %cst_37 = arith.constant 0.000000e+00 : f32
    %49 = vector.broadcast %cst_37 : f32 to vector<16x16xf32>
    %50 = arith.cmpf ogt, %48, %49 : vector<16x16xf32>
    %cst_38 = arith.constant 2.000000e-01 : f32
    %51 = vector.broadcast %cst_38 : f32 to vector<16x16xf32>
    %52 = arith.mulf %51, %48 : vector<16x16xf32>
    %53 = arith.select %50, %48, %52 : vector<16x16xi1>, vector<16x16xf32>
    %cst_39 = arith.constant -1.000000e+30 : f32
    %54 = vector.broadcast %cst_39 : f32 to vector<16x16xf32>
    %55 = arith.select %28, %53, %54 : vector<16x16xi1>, vector<16x16xf32>
    %cst_40 = arith.constant dense<0xFF800000> : vector<16xf32>
    %56 = vector.multi_reduction <maximumf>, %55, %cst_40 [1] : vector<16x16xf32> to vector<16xf32>
    %57 = vector.shape_cast %56 : vector<16xf32> to vector<16x1xf32>
    %58 = vector.broadcast %57 : vector<16x1xf32> to vector<16x16xf32>
    %59 = arith.subf %55, %58 : vector<16x16xf32>
    %60 = math.exp %59 : vector<16x16xf32>
    %cst_41 = arith.constant dense<0.000000e+00> : vector<16xf32>
    %61 = vector.multi_reduction <add>, %60, %cst_41 [1] : vector<16x16xf32> to vector<16xf32>
    %62 = vector.shape_cast %61 : vector<16xf32> to vector<16x1xf32>
    %63 = vector.broadcast %62 : vector<16x1xf32> to vector<16x16xf32>
    %64 = arith.divf %60, %63 : vector<16x16xf32>
    %cst_42 = arith.constant dense<0.000000e+00> : vector<16x32xf32>
    %65 = tpu.matmul %64, %34, %cst_42 {dimension_numbers = #tpu.dot_dimension_numbers<[1], [0], [0], [1], [0, 0, 1, 1], [], []>} : vector<16x16xf32>, vector<16x32xf32>, vector<16x32xf32> -> vector<16x32xf32>
    %66 = vector.extract_strided_slice %32 {offsets = [0, 0], sizes = [1, 32], strides = [1, 1]} : vector<2x32xf32> to vector<1x32xf32>
    %67 = vector.broadcast %66 : vector<1x32xf32> to vector<16x32xf32>
    %68 = arith.addf %65, %67 : vector<16x32xf32>
    %cst_43 = arith.constant 0.000000e+00 : f32
    %69 = vector.broadcast %cst_43 : f32 to vector<16x32xf32>
    %70 = arith.maximumf %68, %69 : vector<16x32xf32>
    %71 = vector.extract_strided_slice %33 {offsets = [0, 32], sizes = [16, 32], strides = [1, 1]} : vector<16x64xf32> to vector<16x32xf32>
    %72 = vector.extract_strided_slice %30 {offsets = [1, 0], sizes = [1, 32], strides = [1, 1]} : vector<2x32xf32> to vector<1x32xf32>
    %73 = vector.broadcast %72 : vector<1x32xf32> to vector<16x32xf32>
    %74 = arith.mulf %71, %73 : vector<16x32xf32>
    %cst_44 = arith.constant dense<0.000000e+00> : vector<16xf32>
    %75 = vector.multi_reduction <add>, %74, %cst_44 [1] : vector<16x32xf32> to vector<16xf32>
    %76 = vector.shape_cast %75 : vector<16xf32> to vector<16x1xf32>
    %77 = vector.extract_strided_slice %31 {offsets = [1, 0], sizes = [1, 32], strides = [1, 1]} : vector<2x32xf32> to vector<1x32xf32>
    %78 = vector.broadcast %77 : vector<1x32xf32> to vector<16x32xf32>
    %79 = arith.mulf %71, %78 : vector<16x32xf32>
    %cst_45 = arith.constant dense<0.000000e+00> : vector<16xf32>
    %80 = vector.multi_reduction <add>, %79, %cst_45 [1] : vector<16x32xf32> to vector<16xf32>
    %81 = vector.shape_cast %80 : vector<16xf32> to vector<16x1xf32>
    %82 = tpu.transpose %76, [1, 0] : vector<16x1xf32> -> vector<1x16xf32>
    %83 = vector.broadcast %81 : vector<16x1xf32> to vector<16x16xf32>
    %84 = vector.broadcast %82 : vector<1x16xf32> to vector<16x16xf32>
    %85 = arith.addf %83, %84 : vector<16x16xf32>
    %cst_46 = arith.constant 0.000000e+00 : f32
    %86 = vector.broadcast %cst_46 : f32 to vector<16x16xf32>
    %87 = arith.cmpf ogt, %85, %86 : vector<16x16xf32>
    %cst_47 = arith.constant 2.000000e-01 : f32
    %88 = vector.broadcast %cst_47 : f32 to vector<16x16xf32>
    %89 = arith.mulf %88, %85 : vector<16x16xf32>
    %90 = arith.select %87, %85, %89 : vector<16x16xi1>, vector<16x16xf32>
    %cst_48 = arith.constant -1.000000e+30 : f32
    %91 = vector.broadcast %cst_48 : f32 to vector<16x16xf32>
    %92 = arith.select %28, %90, %91 : vector<16x16xi1>, vector<16x16xf32>
    %cst_49 = arith.constant dense<0xFF800000> : vector<16xf32>
    %93 = vector.multi_reduction <maximumf>, %92, %cst_49 [1] : vector<16x16xf32> to vector<16xf32>
    %94 = vector.shape_cast %93 : vector<16xf32> to vector<16x1xf32>
    %95 = vector.broadcast %94 : vector<16x1xf32> to vector<16x16xf32>
    %96 = arith.subf %92, %95 : vector<16x16xf32>
    %97 = math.exp %96 : vector<16x16xf32>
    %cst_50 = arith.constant dense<0.000000e+00> : vector<16xf32>
    %98 = vector.multi_reduction <add>, %97, %cst_50 [1] : vector<16x16xf32> to vector<16xf32>
    %99 = vector.shape_cast %98 : vector<16xf32> to vector<16x1xf32>
    %100 = vector.broadcast %99 : vector<16x1xf32> to vector<16x16xf32>
    %101 = arith.divf %97, %100 : vector<16x16xf32>
    %cst_51 = arith.constant dense<0.000000e+00> : vector<16x32xf32>
    %102 = tpu.matmul %101, %71, %cst_51 {dimension_numbers = #tpu.dot_dimension_numbers<[1], [0], [0], [1], [0, 0, 1, 1], [], []>} : vector<16x16xf32>, vector<16x32xf32>, vector<16x32xf32> -> vector<16x32xf32>
    %103 = vector.extract_strided_slice %32 {offsets = [1, 0], sizes = [1, 32], strides = [1, 1]} : vector<2x32xf32> to vector<1x32xf32>
    %104 = vector.broadcast %103 : vector<1x32xf32> to vector<16x32xf32>
    %105 = arith.addf %102, %104 : vector<16x32xf32>
    %cst_52 = arith.constant 0.000000e+00 : f32
    %106 = vector.broadcast %cst_52 : f32 to vector<16x32xf32>
    %107 = arith.maximumf %105, %106 : vector<16x32xf32>
    %108 = tpu.concatenate %70, %107 in 1 : vector<16x32xf32>, vector<16x32xf32> -> vector<16x64xf32>
    %c0_53 = arith.constant 0 : index
    %c0_54 = arith.constant 0 : index
    %109 = vector.load %arg14[%c0_53, %c0_54] : memref<64x8xf32, #tpu.memory_space<vmem>>, vector<64x8xf32>
    %c0_55 = arith.constant 0 : index
    %c0_56 = arith.constant 0 : index
    %110 = vector.load %arg15[%c0_55, %c0_56] : memref<1x8xf32, #tpu.memory_space<vmem>>, vector<1x8xf32>
    %c0_57 = arith.constant 0 : index
    %c0_58 = arith.constant 0 : index
    %111 = vector.load %arg16[%c0_57, %c0_58] : memref<1x8xf32, #tpu.memory_space<vmem>>, vector<1x8xf32>
    %c0_59 = arith.constant 0 : index
    %c0_60 = arith.constant 0 : index
    %112 = vector.load %arg17[%c0_59, %c0_60] : memref<1x8xf32, #tpu.memory_space<vmem>>, vector<1x8xf32>
    %cst_61 = arith.constant dense<0.000000e+00> : vector<16x8xf32>
    %113 = tpu.matmul %108, %109, %cst_61 {dimension_numbers = #tpu.dot_dimension_numbers<[1], [0], [0], [1], [0, 0, 1, 1], [], []>} : vector<16x64xf32>, vector<64x8xf32>, vector<16x8xf32> -> vector<16x8xf32>
    %114 = vector.broadcast %110 : vector<1x8xf32> to vector<16x8xf32>
    %115 = arith.mulf %113, %114 : vector<16x8xf32>
    %cst_62 = arith.constant dense<0.000000e+00> : vector<16xf32>
    %116 = vector.multi_reduction <add>, %115, %cst_62 [1] : vector<16x8xf32> to vector<16xf32>
    %117 = vector.shape_cast %116 : vector<16xf32> to vector<16x1xf32>
    %118 = vector.broadcast %111 : vector<1x8xf32> to vector<16x8xf32>
    %119 = arith.mulf %113, %118 : vector<16x8xf32>
    %cst_63 = arith.constant dense<0.000000e+00> : vector<16xf32>
    %120 = vector.multi_reduction <add>, %119, %cst_63 [1] : vector<16x8xf32> to vector<16xf32>
    %121 = vector.shape_cast %120 : vector<16xf32> to vector<16x1xf32>
    %122 = tpu.transpose %117, [1, 0] : vector<16x1xf32> -> vector<1x16xf32>
    %123 = vector.broadcast %121 : vector<16x1xf32> to vector<16x16xf32>
    %124 = vector.broadcast %122 : vector<1x16xf32> to vector<16x16xf32>
    %125 = arith.addf %123, %124 : vector<16x16xf32>
    %cst_64 = arith.constant 0.000000e+00 : f32
    %126 = vector.broadcast %cst_64 : f32 to vector<16x16xf32>
    %127 = arith.cmpf ogt, %125, %126 : vector<16x16xf32>
    %cst_65 = arith.constant 2.000000e-01 : f32
    %128 = vector.broadcast %cst_65 : f32 to vector<16x16xf32>
    %129 = arith.mulf %128, %125 : vector<16x16xf32>
    %130 = arith.select %127, %125, %129 : vector<16x16xi1>, vector<16x16xf32>
    %cst_66 = arith.constant -1.000000e+30 : f32
    %131 = vector.broadcast %cst_66 : f32 to vector<16x16xf32>
    %132 = arith.select %28, %130, %131 : vector<16x16xi1>, vector<16x16xf32>
    %cst_67 = arith.constant dense<0xFF800000> : vector<16xf32>
    %133 = vector.multi_reduction <maximumf>, %132, %cst_67 [1] : vector<16x16xf32> to vector<16xf32>
    %134 = vector.shape_cast %133 : vector<16xf32> to vector<16x1xf32>
    %135 = vector.broadcast %134 : vector<16x1xf32> to vector<16x16xf32>
    %136 = arith.subf %132, %135 : vector<16x16xf32>
    %137 = math.exp %136 : vector<16x16xf32>
    %cst_68 = arith.constant dense<0.000000e+00> : vector<16xf32>
    %138 = vector.multi_reduction <add>, %137, %cst_68 [1] : vector<16x16xf32> to vector<16xf32>
    %139 = vector.shape_cast %138 : vector<16xf32> to vector<16x1xf32>
    %140 = vector.broadcast %139 : vector<16x1xf32> to vector<16x16xf32>
    %141 = arith.divf %137, %140 : vector<16x16xf32>
    %cst_69 = arith.constant dense<0.000000e+00> : vector<16x8xf32>
    %142 = tpu.matmul %141, %113, %cst_69 {dimension_numbers = #tpu.dot_dimension_numbers<[1], [0], [0], [1], [0, 0, 1, 1], [], []>} : vector<16x16xf32>, vector<16x8xf32>, vector<16x8xf32> -> vector<16x8xf32>
    %143 = vector.broadcast %112 : vector<1x8xf32> to vector<16x8xf32>
    %144 = arith.addf %142, %143 : vector<16x8xf32>
    %c0_70 = arith.constant 0 : index
    %c0_71 = arith.constant 0 : index
    %145 = vector.load %arg18[%c0_70, %c0_71] : memref<16x8xf32, #tpu.memory_space<vmem>>, vector<16x8xf32>
    tpu.vector_store %arg18[%c0_70, %c0_71], %144 {strides = array<i32>} : memref<16x8xf32, #tpu.memory_space<vmem>>, vector<16x8xf32>,
    return
  }
}

</mosaic_0001>

<bundles_post_ra>
// kernel: tpu_custom_call.1
= control target key start
LH: loop header
LB: loop body
LE: loop exit
PB: predicated region body
PF: predicated region fallthrough
CT: control target
= control target key end

     0   :  { %s2014_s0 = inlined_call_operand.hbm [shape: f32[16,32], index: 0, kind: input, shape index: {}]   ;;  %s2015_s1 = inlined_call_operand.hbm [shape: f32[16,16], index: 1, kind: input, shape index: {}]   ;;  %s2016_s2 = inlined_call_operand.hbm [shape: f32[16,16], index: 2, kind: input, shape index: {}]   ;;  %s2017_s3 = inlined_call_operand.vmem [shape: f32[32,32], index: 3, kind: input, shape index: {}]   ;;  %s2018_s4 = inlined_call_operand.hbm [shape: f32[1,32], index: 4, kind: input, shape index: {}]   ;;  %s2019_s5 = inlined_call_operand.vmem [shape: f32[16,32], index: 5, kind: input, shape index: {}]   ;;  %s2020_s6 = inlined_call_operand.hbm [shape: f32[1,32], index: 6, kind: input, shape index: {}]   ;;  %s2021_s7 = inlined_call_operand.vmem [shape: f32[32,32], index: 7, kind: input, shape index: {}]   ;;  %s2022_s8 = inlined_call_operand.hbm [shape: f32[32,32], index: 8, kind: input, shape index: {}]   ;;  %s2023_s9 = inlined_call_operand.hbm [shape: f32[1,32], index: 9, kind: input, shape index: {}]   ;;  %s2024_s10 = inlined_call_operand.hbm [shape: f32[32,64], index: 10, kind: input, shape index: {}]   ;;  %s2025_s11 = inlined_call_operand.vmem [shape: f32[2,32], index: 11, kind: input, shape index: {}]   ;;  %s2026_s12 = inlined_call_operand.vmem [shape: f32[2,32], index: 12, kind: input, shape index: {}]   ;;  %s2027_s13 = inlined_call_operand.vmem [shape: f32[2,32], index: 13, kind: input, shape index: {}]   ;;  %s2028_s14 = inlined_call_operand.vmem [shape: f32[64,8], index: 14, kind: input, shape index: {}]   ;;  %s2029_s15 = inlined_call_operand.vmem [shape: f32[1,8], index: 15, kind: input, shape index: {}]   ;;  %s2030_s16 = inlined_call_operand.vmem [shape: f32[1,8], index: 16, kind: input, shape index: {}]   ;;  %s2031_s17 = inlined_call_operand.vmem [shape: f32[1,8], index: 17, kind: input, shape index: {}]   ;;  %s2032_s18 = inlined_call_operand.vmem [shape: f32[16,8], index: 18, kind: output, shape index: {}]  }
   0x1   :  { %2033 = sst [smem:[#allocation20_spill]] %s2014_s0 }
   0x2   :  { %2034 = sst [smem:[#allocation21_spill]] %s2015_s1 }
   0x3   :  { %2035 = sst [smem:[#allocation22_spill]] %s2016_s2 }
   0x4   :  { %23 = vsyncpa [#allocation3], 0 }
   0x5   :  { %24 = vsyncpa [#allocation5], 0 }
   0x6   :  { %25 = vsyncpa [#allocation8], 0 }
   0x7   :  { %26 = vsyncpa [#allocation11], 0 }
   0x8   :  { %27 = vsyncpa [#allocation14], 0  ;;  %s1687_s27 = smov [#allocation4]   ;;  %s1688_s29 = smov [#allocation7]  }
   0x9   :  { %s45_s28 = sshll.u32 %s1687_s27, 4  ;;  %s72_s30 = sshll.u32 %s1688_s29, 4  ;;  %s46_s28 = int_to_ptr.vmem [resolvable:$true] %s45_s28  ;;  %s73_s30 = int_to_ptr.vmem [resolvable:$true] %s72_s30 }
   0xa   :  { %s1525_s0 = scalar_lea.vmem %s46_s28, 256  ;;  %p1530_p1 = scmp.lt.s32.totalorder %s46_s28, %s46_s28 }
   0xb   :  { %p1526_p0 = scmp.ne.s32.totalorder %s46_s28, %s1525_s0  ;;  %p1531_p2 = scmp.lt.s32.totalorder %s1525_s0, %s1525_s0 }
   0xd   :  { %p1532_p3 = por %p1531_p2, %p1530_p1 }
   0xf   :  { %p1533_p4 = pnand %p1532_p3, %p1526_p0 }
  0x11   :  { %1536 = shalt.err (!%p1533_p4)
}
  0x12   :  { %s1689_s19 = smov 128   ;;  %s1690_s1 = smov 8  }
  0x13   :  { %s2036_s22 = sld [smem:[#allocation21_spill]]  ;;  %s1545_s2 = scalar_lea.vmem %s73_s30, 16 }
  0x14   :  { %p1546_p5 = scmp.ne.s32.totalorder %s73_s30, %s1545_s2  ;;  %s1549_s23 = scalar_lea.vmem %s73_s30, 32 }
  0x15   :  { %p1550_p6 = scmp.lt.s32.totalorder %s73_s30, %s73_s30  ;;  %p1551_p7 = scmp.lt.s32.totalorder %s1549_s23, %s1545_s2 }
  0x17   :  { %p1552_p8 = por %p1551_p7, %p1550_p6 }
  0x19   :  { %51 = dma.hbm_to_vmem [thread:$0]  %s2036_s22, 256, %s46_s28, [#allocation5], %s1689_s19, %s1689_s19, %s1690_s1  }
  0x1a   :  { %p1553_p9 = pnand %p1552_p8, %p1546_p5 }
  0x1c   :  { %1556 = shalt.err (!%p1553_p9)
}
  0x1d   :  { %75 = dma.hbm_to_vmem [thread:$0]  %s2018_s4, 16, %s73_s30, [#allocation8]  }
  0x1e   :  { %s1691_s26 = smov [#allocation10]   ;;  %s1692_s29 = smov [#allocation2]  }
  0x1f   :  { %s95_s27 = sshll.u32 %s1691_s26, 4  ;;  %s33_s0 = sshll.u32 %s1692_s29, 4  ;;  %s96_s27 = int_to_ptr.vmem [resolvable:$true] %s95_s27  ;;  %s34_s0 = int_to_ptr.vmem [resolvable:$true] %s33_s0 }
  0x20   :  { %s1565_s20 = scalar_lea.vmem %s96_s27, 512  ;;  %p1570_p11 = scmp.lt.s32.totalorder %s96_s27, %s96_s27 }
  0x21   :  { %p1566_p10 = scmp.ne.s32.totalorder %s96_s27, %s1565_s20  ;;  %p1571_p12 = scmp.lt.s32.totalorder %s1565_s20, %s1565_s20 }
  0x23   :  { %p1572_p13 = por %p1571_p12, %p1570_p11 }
  0x25   :  { %p1573_p0 = pnand %p1572_p13, %p1566_p10 }
  0x27   :  { %1576 = shalt.err (!%p1573_p0)
}
  0x28   :  { %101 = dma.hbm_to_vmem [thread:$0]  %s2022_s8, 512, %s96_s27, [#allocation11], %s1689_s19, %s1689_s19, %s1690_s1  }
  0x29   :  { %s1585_s4 = scalar_lea.vmem %s34_s0, 256  ;;  %p1590_p2 = scmp.lt.s32.totalorder %s34_s0, %s34_s0 }
  0x2a   :  { %p1586_p1 = scmp.ne.s32.totalorder %s34_s0, %s1585_s4  ;;  %p1591_p3 = scmp.lt.s32.totalorder %s1585_s4, %s1585_s4 }
  0x2c   :  { %p1592_p4 = por %p1591_p3, %p1590_p2 }
  0x2e   :  { %p1593_p5 = pnand %p1592_p4, %p1586_p1 }
  0x30   :  { %1596 = shalt.err (!%p1593_p5)
}
  0x31   :  { %s2037_s2 = sld [smem:[#allocation20_spill]]  ;;  %s1693_s23 = smov [#allocation6]  }
  0x32   :  { %s57_s24 = sshll.u32 %s1693_s23, 4  ;;  %s1694_s25 = smov [#allocation9]   ;;  %s58_s24 = int_to_ptr.vmem [resolvable:$true] %s57_s24 }
  0x33   :  { %s84_s26 = sshll.u32 %s1694_s25, 4  ;;  %s1605_s8 = scalar_lea.vmem %s58_s24, 256  ;;  %s85_s26 = int_to_ptr.vmem [resolvable:$true] %s84_s26 }
  0x34   :  { %p1606_p6 = scmp.ne.s32.totalorder %s58_s24, %s1605_s8  ;;  %p1610_p7 = scmp.lt.s32.totalorder %s58_s24, %s58_s24 }
  0x35   :  { %p1611_p8 = scmp.lt.s32.totalorder %s1605_s8, %s1605_s8 }
  0x37   :  { %39 = dma.hbm_to_vmem [thread:$0]  %s2037_s2, 256, %s34_s0, [#allocation3], %s1689_s19, %s1689_s19, %s1690_s1  }
  0x38   :  { %p1612_p9 = por %p1611_p8, %p1610_p7 }
  0x3a   :  { %p1613_p10 = pnand %p1612_p9, %p1606_p6 }
  0x3c   :  { %1616 = shalt.err (!%p1613_p10)
}
  0x3d   :  { %s2038_s20 = sld [smem:[#allocation22_spill]]  ;;  %s1625_s0 = scalar_lea.vmem %s85_s26, 16 }
  0x3e   :  { %p1626_p11 = scmp.ne.s32.totalorder %s85_s26, %s1625_s0  ;;  %s1629_s28 = scalar_lea.vmem %s85_s26, 32 }
  0x3f   :  { %p1630_p12 = scmp.lt.s32.totalorder %s85_s26, %s85_s26  ;;  %p1631_p13 = scmp.lt.s32.totalorder %s1629_s28, %s1625_s0 }
  0x41   :  { %p1632_p0 = por %p1631_p13, %p1630_p12 }
  0x43   :  { %63 = dma.hbm_to_vmem [thread:$0]  %s2038_s20, 256, %s58_s24, [#allocation5], %s1689_s19, %s1689_s19, %s1690_s1  }
  0x44   :  { %p1633_p1 = pnand %p1632_p0, %p1626_p11 }
  0x46   :  { %1636 = shalt.err (!%p1633_p1)
}
  0x47   :  { %87 = dma.hbm_to_vmem [thread:$0]  %s2020_s6, 16, %s85_s26, [#allocation8]  }
  0x48   :  { %s1695_s30 = smov [#allocation12]   ;;  %s1696_s2 = smov [#allocation13]  }
  0x49   :  { %s108_s22 = sshll.u32 %s1695_s30, 4  ;;  %s117_s23 = sshll.u32 %s1696_s2, 4  ;;  %s109_s22 = int_to_ptr.vmem [resolvable:$true] %s108_s22  ;;  %s118_s23 = int_to_ptr.vmem [resolvable:$true] %s117_s23 }
  0x4a   :  { %s1645_s25 = scalar_lea.vmem %s109_s22, 16  ;;  %s1649_s24 = scalar_lea.vmem %s109_s22, 32 }
  0x4b   :  { %p1646_p2 = scmp.ne.s32.totalorder %s109_s22, %s1645_s25  ;;  %p1650_p3 = scmp.lt.s32.totalorder %s109_s22, %s109_s22 }
  0x4c   :  { %p1651_p4 = scmp.lt.s32.totalorder %s1649_s24, %s1645_s25 }
  0x4e   :  { %p1652_p5 = por %p1651_p4, %p1650_p3 }
  0x50   :  { %p1653_p6 = pnand %p1652_p5, %p1646_p2 }
  0x52   :  { %1656 = shalt.err (!%p1653_p6)
}
  0x53   :  { %111 = dma.hbm_to_vmem [thread:$0]  %s2023_s9, 16, %s109_s22, [#allocation11]  }
  0x54   :  { %s1665_s29 = scalar_lea.vmem %s118_s23, 512  ;;  %p1670_p8 = scmp.lt.s32.totalorder %s118_s23, %s118_s23 }
  0x55   :  { %p1666_p7 = scmp.ne.s32.totalorder %s118_s23, %s1665_s29  ;;  %p1671_p9 = scmp.lt.s32.totalorder %s1665_s29, %s1665_s29 }
  0x57   :  { %p1672_p10 = por %p1671_p9, %p1670_p8 }
  0x59   :  { %p1673_p11 = pnand %p1672_p10, %p1666_p7 }
  0x5b   :  { %1676 = shalt.err (!%p1673_p11)
}
  0x5c   :  { %123 = dma.hbm_to_vmem [thread:$0]  %s2024_s10, 512, %s118_s23, [#allocation14], %s1689_s19, %s1689_s19, %s1690_s1  }
  0x5d   :  { %1677 = dma.done.wait [#allocation3], 256  }
  0x5e   :  { %1678 = vsyncadd [#allocation3], 4294967040 }
  0x5f   :  { %1679 = dma.done.wait [#allocation5], 512  }
  0x60   :  { %1680 = vsyncadd [#allocation5], 4294966784 }
  0x61   :  { %1681 = dma.done.wait [#allocation8], 32  }
  0x62   :  { %1682 = vsyncadd [#allocation8], 4294967264 }
  0x63   :  { %1683 = dma.done.wait [#allocation11], 528  }
  0x64   :  { %1684 = vsyncadd [#allocation11], 4294966768 }
  0x65   :  { %1685 = dma.done.wait [#allocation14], 512  }
  0x66   :  { %1686 = vsyncadd [#allocation14], 4294966784  ;;  %vm175_vm0 = vcmask 261120   ;;  %v167_v0 = vld [vmem:[%s2017_s3 + $0x18] sm:$0xff]  ;;  %v166_v1 = vld [vmem:[%s2017_s3 + $0x10] sm:$0xff]  ;;  %vm270_vm1 = vcmask 130048   ;;  %v627_v36 = vlaneseq }
  0x67   :  { %1389 = vmatprep.subr.mxu0 %v167_v0  ;;  %v162_v2 = vld [vmem:[#allocation2] sm:$0xff]  ;;  %v165_v3 = vld [vmem:[%s2017_s3 + $0x8] sm:$0xff]  ;;  %v259_v7 = vld [vmem:[#allocation4] sm:$0xff]  ;;  %s1697_s20 = smov 32   ;;  %vm1038_vm8 = vcmask 523264   ;;  %vm1128_vm9 = vcmask 64512  }
  0x68   :  { %1390 = vmatpush3.msra.mxu0 %v167_v0  ;;  %1397 = vmatprep.mubr.msk.f32.mxu0 %vm175_vm0, %v162_v2  ;;  %v164_v4 = vld [vmem:[%s2017_s3] sm:$0xff]  ;;  %v163_v5 = vld [vmem:[#allocation2 + $0x8] sm:$0xff]  ;;  %v260_v9 = vld [vmem:[#allocation4 + $0x8] sm:$0xff]  ;;  %v628_v37 = vshrl.u32 %v627_v36, 7 }
  0x69   :  { %1391 = vmatprep.subr.mxu0 %v166_v1  ;;  %v262_v6 = vld [vmem:[%s2019_s5 + $0x8] sm:$0xff]  ;;  %v261_v8 = vld [vmem:[%s2019_s5] sm:$0xff]  ;;  %v357_v10 = vld [vmem:[%s2021_s7 + $0x18] sm:$0xff] }
  0x6a   :  { %1392 = vmatpush3.msra.mxu0 %v166_v1  ;;  %v356_v11 = vld [vmem:[%s2021_s7 + $0x10] sm:$0xff]  ;;  %v355_v13 = vld [vmem:[%s2021_s7 + $0x8] sm:$0xff]  ;;  %v354_v15 = vld [vmem:[%s2021_s7] sm:$0xff]  ;;  %v1874_v39 = vsub.s32 1, %v628_v37  ;;  %v1901_v62 = vsub.s32 0, %v628_v37 }
  0x6b   :  { %1393 = vmatprep.subr.mxu0 %v165_v3  ;;  %v361_v12 = vld [vmem:[#allocation10 + $0x18] sm:$0xff]  ;;  %v360_v14 = vld [vmem:[#allocation10 + $0x10] sm:$0xff]  ;;  %v359_v16 = vld [vmem:[#allocation10 + $0x8] sm:$0xff] }
  0x6c   :  { %1394 = vmatpush3.msra.mxu0 %v165_v3  ;;  %1407 = vmatprep.subr.mxu1 %v361_v12  ;;  %v358_v17 = vld [vmem:[#allocation10] sm:$0xff]  ;;  %v1315_v18 = vld [vmem:[#allocation7] ss:$0 sm:$0xff]  ;;  %v1318_v23 = vld [vmem:[#allocation9] ss:$0 sm:$0xff] }
  0x6d   :  { %1395 = vmatprep.subr.mxu0 %v164_v4  ;;  %1408 = vmatpush3.msra.mxu1 %v361_v12  ;;  %v542_v32 = vld [vmem:[#allocation13 + $0x18] sm:$0xff]  ;;  %v541_v33 = vld [vmem:[#allocation13 + $0x10] sm:$0xff]  ;;  %v540_v34 = vld [vmem:[#allocation13 + $0x8] sm:$0xff] }
  0x6e   :  { %1396 = vmatpush3.msra.mxu0 %v164_v4  ;;  %1409 = vmatprep.subr.mxu1 %v360_v14  ;;  %v539_v35 = vld [vmem:[#allocation13] sm:$0xff]  ;;  %v543_v38 = vld [vmem:[%s2025_s11] sm:$0x3]  ;;  %v1325_v46 = vld [vmem:[#allocation12] ss:$0 sm:$0xff]  ;;  %s1698_s11 = smov 96  }
  0x6f   :  { %1398 = vmatmul.mubr.msk.f32.vlgmr.msra.gmra.mxu0 %vm175_vm0, %v163_v5  ;;  %1400 = vmatprep.subr.mxu0 %v262_v6  ;;  %v544_v40 = vld [vmem:[%s2026_s12] sm:$0x3]  ;;  %v809_v41 = vrot.slane %v543_v38, %v1874_v39  ;;  %v630_v63 = vrot.slane %v543_v38, %v1901_v62 }
  0x70   :  { %1401 = vmatpush3.msra.mxu0 %v262_v6  ;;  %1404 = vmatprep.mubr.msk.f32.mxu0 %vm270_vm1, %v259_v7  ;;  %v833_v42 = vrot.slane %v544_v40, %v1874_v39  ;;  %v642_v3 = vrot.slane %v544_v40, %v1901_v62 }
  0x71   :  { %1402 = vmatprep.subr.mxu0 %v261_v8  ;;  %1410 = vmatpush3.msra.mxu1 %v360_v14 }
  0x72   :  { %1403 = vmatpush3.msra.mxu0 %v261_v8  ;;  %1411 = vmatprep.subr.mxu1 %v359_v16 }
  0x73   :  { %1405 = vmatmul.mubr.msk.f32.vlgmr.msra.gmra.mxu0 %vm270_vm1, %v260_v9  ;;  %1418 = vmatprep.subr.mxu0 %v357_v10 }
  0x74   :  { %1419 = vmatpush3.msra.mxu0 %v357_v10  ;;  %1412 = vmatpush3.msra.mxu1 %v359_v16 }
  0x75   :  { %1420 = vmatprep.subr.mxu0 %v356_v11  ;;  %1413 = vmatprep.subr.mxu1 %v358_v17 }
  0x76   :  { %1421 = vmatpush3.msra.mxu0 %v356_v11  ;;  %1414 = vmatpush3.msra.mxu1 %v358_v17 }
  0x77   :  { %1422 = vmatprep.subr.mxu0 %v355_v13  ;;  %1429 = vmatprep.subr.mxu1 %v542_v32 }
  0x78   :  { %1423 = vmatpush3.msra.mxu0 %v355_v13  ;;  %811 = vrot.lane.b32.xlu0 %v809_v41, %s1697_s20 }
  0x79   :  { %1424 = vmatprep.subr.mxu0 %v354_v15 }
  0x7a   :  { %1425 = vmatpush3.msra.mxu0 %v354_v15 }
  0x7c   :  { %835 = vrot.lane.b32.xlu0 %v833_v42, %s1697_s20 }
  0xea   :  { %v812_v54 = vpop.permute.xlu0 %811 }
  0xee   :  { %v836_v56 = vpop.permute.xlu0 %835 }
 0x12f   :  { %v1399_v19 = vpop.f32.mrf.mxu0 }
 0x130   :  { %v254_v20 = vadd.f32 %v1399_v19, %v1315_v18 }
 0x131   :  { %v248_v21 = vpop.f32.mrf.mxu0 }
 0x132   :  { %v249_v22 = vadd.f32 %v1315_v18, %v248_v21  ;;  %v258_v26 = vmax.f32 %v254_v20, 0.0 }
 0x133   :  { %v1406_v24 = vpop.f32.mrf.mxu0 }
 0x134   :  { %v257_v25 = vmax.f32 %v249_v22, 0.0  ;;  %v349_v27 = vadd.f32 %v1406_v24, %v1318_v23 }
 0x135   :  { %v343_v28 = vpop.f32.mrf.mxu0 }
 0x136   :  { %v344_v29 = vadd.f32 %v1318_v23, %v343_v28  ;;  %1426 = vmatprep.mubr.msk.f32.mxu0 %vm175_vm0, %v257_v25  ;;  %v353_v31 = vmax.f32 %v349_v27, 0.0  ;;  %v1918_v25 = vld [vmem:[#allocation6] sm:$0xff] }
 0x137   :  { %1427 = vmatmul.mubr.msk.f32.vlgmr.msra.gmra.mxu0 %vm175_vm0, %v258_v26  ;;  %v1920_v26 = vld [vmem:[#allocation6 + $0x8] sm:$0xff]  ;;  %vm537_vm2 = vcmp.gt.f32.partialorder %v1918_v25, 0.0 }
 0x138   :  { %v352_v30 = vmax.f32 %v344_v29, 0.0  ;;  %vm538_vm3 = vcmp.gt.f32.partialorder %v1920_v26, 0.0 }
 0x13a   :  { %1415 = vmatprep.mubr.msk.f32.mxu1 %vm175_vm0, %v352_v30 }
 0x13b   :  { %1416 = vmatmul.mubr.msk.f32.vlgmr.msra.gmra.mxu1 %vm175_vm0, %v353_v31 }
 0x13c   :  { %1430 = vmatpush3.msra.mxu1 %v542_v32 }
 0x13d   :  { %1431 = vmatprep.subr.mxu1 %v541_v33 }
 0x13e   :  { %1432 = vmatpush3.msra.mxu1 %v541_v33 }
 0x13f   :  { %1433 = vmatprep.subr.mxu1 %v540_v34 }
 0x140   :  { %1434 = vmatpush3.msra.mxu1 %v540_v34 }
 0x141   :  { %1435 = vmatprep.subr.mxu1 %v539_v35 }
 0x142   :  { %1436 = vmatpush3.msra.mxu1 %v539_v35 }
 0x1f7   :  { %v1428_v43 = vpop.f32.mrf.mxu0 }
 0x1f9   :  { %v515_v47 = vpop.f32.mrf.mxu0 }
 0x1fb   :  { %v1417_v44 = vpop.f32.mrf.mxu1 }
 0x1fc   :  { %v521_v45 = vadd.f32 %v1428_v43, %v1417_v44 }
 0x1fd   :  { %v434_v48 = vpop.f32.mrf.mxu1 }
 0x1fe   :  { %v516_v49 = vadd.f32 %v515_v47, %v434_v48  ;;  %v532_v50 = vadd.f32 %v1325_v46, %v521_v45 }
 0x200   :  { %v531_v51 = vadd.f32 %v1325_v46, %v516_v49  ;;  %v534_v53 = vmax.f32 %v532_v50, 0.0 }
 0x202   :  { %v533_v52 = vmax.f32 %v531_v51, 0.0 }
 0x204   :  { %1437 = vmatprep.mubr.msk.f32.mxu1 %vm175_vm0, %v533_v52 }
 0x205   :  { %1438 = vmatmul.mubr.msk.f32.vlgmr.msra.gmra.mxu1 %vm175_vm0, %v534_v53 }
 0x2c5   :  { %v1885_v55 = vpop.f32.mrf.mxu1 }
 0x2c6   :  { %1440 = vmatprep.subr.mxu0 %v1885_v55  ;;  %v815_v60 = vmul.f32 %v1885_v55, %v812_v54  ;;  %v839_v61 = vmul.f32 %v1885_v55, %v836_v56  ;;  %v632_v2 = vmul.f32 %v1885_v55, %v630_v63  ;;  %v644_v13 = vmul.f32 %v1885_v55, %v642_v3 }
 0x2c7   :  { %v1888_v57 = vpop.f32.mrf.mxu1  ;;  %1441 = vmatpush3.msra.mxu0 %v1885_v55 }
 0x2c8   :  { %1442 = vmatprep.subr.mxu0 %v1888_v57  ;;  %v838_v58 = vmul.f32 %v836_v56, %v1888_v57  ;;  %v814_v59 = vmul.f32 %v812_v54, %v1888_v57  ;;  %v631_v0 = vmul.f32 %v630_v63, %v1888_v57  ;;  %v636_v4 = vsel %vm175_vm0, %v632_v2, 0.0 }
 0x2c9   :  { %1443 = vmatpush3.msra.mxu0 %v1888_v57  ;;  %v643_v5 = vmul.f32 %v642_v3, %v1888_v57  ;;  %v648_v14 = vsel %vm175_vm0, %v644_v13, 0.0 }
 0x2ca   :  { %842 = vrot.lane.b32.xlu0 %v838_v58, %s1698_s11  ;;  %818 = vrot.lane.b32.xlu1 %v814_v59, %s1698_s11  ;;  %v633_v1 = vsel %vm175_vm0, %v631_v0, 0.0 }
 0x2cb   :  { %v645_v6 = vsel %vm175_vm0, %v643_v5, 0.0 }
 0x2ce   :  { %820 = vrot.lane.b32.xlu1 %v815_v60, %s1698_s11 }
 0x2d2   :  { %844 = vrot.lane.b32.xlu1 %v839_v61, %s1698_s11 }
 0x2e9   :  { %634 = vadd.xlane.f32.xlu0 %v633_v1 }
 0x2f6   :  { %637 = vadd.xlane.f32.xlu1 %v636_v4 }
 0x2fa   :  { %646 = vadd.xlane.f32.xlu1 %v645_v6 }
 0x33c   :  { %v843_v7 = vpop.permute.xlu0 %842  ;;  %v819_v8 = vpop.permute.xlu1 %818 }
 0x33d   :  { %v848_v9 = vsel %vm175_vm0, %v843_v7, 0.0  ;;  %v824_v10 = vsel %vm175_vm0, %v819_v8, 0.0 }
 0x33e   :  { %849 = vadd.xlane.f32.xlu1 %v848_v9  ;;  %825 = vadd.xlane.f32.xlu0 %v824_v10 }
 0x340   :  { %v821_v11 = vpop.permute.xlu1 %820 }
 0x341   :  { %v827_v12 = vsel %vm175_vm0, %v821_v11, 0.0 }
 0x342   :  { %828 = vadd.xlane.f32.xlu0 %v827_v12 }
 0x344   :  { %v845_v15 = vpop.permute.xlu1 %844 }
 0x345   :  { %v851_v16 = vsel %vm175_vm0, %v845_v15, 0.0 }
 0x346   :  { %649 = vadd.xlane.f32.xlu0 %v648_v14 }
 0x34a   :  { %852 = vadd.xlane.f32.xlu0 %v851_v16 }
 0x372   :  { %v635_v17 = vpop.xlane.xlu0 %634 }
 0x373   :  { %651 = vxpose.xlu1.b32.start [1/2] (short) (narrow) %v635_v17, 8 }
 0x37f   :  { %v638_v18 = vpop.xlane.xlu1 %637 }
 0x380   :  { %652 = vxpose.xlu1.b32.end [2/2] (short) (narrow) %v638_v18, 8 }
 0x383   :  { %v647_v20 = vpop.xlane.xlu1 %646 }
 0x3c7   :  { %v826_v19 = vpop.xlane.xlu0 %825  ;;  %v850_v21 = vpop.xlane.xlu1 %849 }
 0x3cb   :  { %v829_v22 = vpop.xlane.xlu0 %828 }
 0x3cf   :  { %v650_v27 = vpop.xlane.xlu0 %649 }
 0x3d3   :  { %v853_v38 = vpop.xlane.xlu0 %852 }
 0x3f8   :  { %v667_v23 = vpop.trf.xlu1 }
 0x3f9   :  { %v686_v24 = vrot.slane %v667_v23, %v1901_v62 }
 0x3fb   :  { %v687_v28 = vadd.f32 %v686_v24, %v647_v20  ;;  %v688_v29 = vadd.f32 %v686_v24, %v650_v27 }
 0x3fd   :  { %vm689_vm4 = vcmp.gt.f32.partialorder %v687_v28, 0.0  ;;  %v691_v30 = vmul.f32 0.2, %v687_v28  ;;  %vm690_vm5 = vcmp.gt.f32.partialorder %v688_v29, 0.0  ;;  %v692_v31 = vmul.f32 0.2, %v688_v29 }
 0x3ff   :  { %v693_v32 = vsel %vm689_vm4, %v687_v28, %v691_v30  ;;  %v694_v33 = vsel %vm690_vm5, %v688_v29, %v692_v31  ;;  %v1034_v29 = vld [vmem:[%s2028_s14 + $0x38] sm:$0xff]  ;;  %v1033_v30 = vld [vmem:[%s2028_s14 + $0x30] sm:$0xff]  ;;  %v1032_v31 = vld [vmem:[%s2028_s14 + $0x28] sm:$0xff] }
 0x400   :  { %v695_v34 = vsel %vm537_vm2, %v693_v32, -1e+30  ;;  %v696_v35 = vsel %vm538_vm3, %v694_v33, -1e+30  ;;  %1454 = vmatprep.subr.mxu1 %v1034_v29  ;;  %v1031_v32 = vld [vmem:[%s2028_s14 + $0x20] sm:$0xff]  ;;  %v1030_v33 = vld [vmem:[%s2028_s14 + $0x18] sm:$0xff] }
 0x401   :  { %v697_v36 = vsel %vm270_vm1, %v695_v34, -inf  ;;  %v700_v37 = vsel %vm270_vm1, %v696_v35, -inf  ;;  %1455 = vmatpush3.msra.mxu1 %v1034_v29 }
 0x402   :  { %698 = vmax.xlane.f32.xlu0 %v697_v36  ;;  %701 = vmax.xlane.f32.xlu1 %v700_v37  ;;  %v1027_v36 = vld [vmem:[%s2028_s14] sm:$0xff] }
 0x403   :  { %1456 = vmatprep.subr.mxu1 %v1033_v30 }
 0x404   :  { %1457 = vmatpush3.msra.mxu1 %v1033_v30 }
 0x405   :  { %1458 = vmatprep.subr.mxu1 %v1032_v31 }
 0x406   :  { %1459 = vmatpush3.msra.mxu1 %v1032_v31 }
 0x407   :  { %1460 = vmatprep.subr.mxu1 %v1031_v32 }
 0x408   :  { %1461 = vmatpush3.msra.mxu1 %v1031_v32  ;;  %v1336_v32 = vld [vmem:[%s2031_s17] ss:$0 sm:$0xff] }
 0x409   :  { %1462 = vmatprep.subr.mxu1 %v1030_v33 }
 0x40a   :  { %1463 = vmatpush3.msra.mxu1 %v1030_v33 }
 0x42f   :  { %854 = vxpose.xlu0.b32.start [1/2] (short) (narrow) %v826_v19, 8 }
 0x433   :  { %855 = vxpose.xlu0.b32.end [2/2] (short) (narrow) %v829_v22, 8 }
 0x48b   :  { %v702_v40 = vpop.xlane.xlu1 %701  ;;  %v699_v41 = vpop.xlane.xlu0 %698 }
 0x48c   :  { %v704_v42 = vsub.f32 %v696_v35, %v702_v40  ;;  %v703_v43 = vsub.f32 %v695_v34, %v699_v41  ;;  %v1029_v34 = vld [vmem:[%s2028_s14 + $0x10] sm:$0xff]  ;;  %v1028_v35 = vld [vmem:[%s2028_s14 + $0x8] sm:$0xff] }
 0x48d   :  { %1464 = vmatprep.subr.mxu1 %v1029_v34 }
 0x48e   :  { %v707_v44 = vmul.f32 1.442695, %v704_v42  ;;  %v705_v45 = vmul.f32 1.442695, %v703_v43  ;;  %1465 = vmatpush3.msra.mxu1 %v1029_v34 }
 0x48f   :  { %1466 = vmatprep.subr.mxu1 %v1028_v35 }
 0x490   :  { %1493 = vpow2.f32 %v707_v44  ;;  %1467 = vmatpush3.msra.mxu1 %v1028_v35 }
 0x491   :  { %1495 = vpow2.f32 %v705_v45  ;;  %1468 = vmatprep.subr.mxu1 %v1027_v36 }
 0x492   :  { %1469 = vmatpush3.msra.mxu1 %v1027_v36 }
 0x49d   :  { %v1494_v58 = vpop.eup %1493 }
 0x49e   :  { %v1496_v61 = vpop.eup %1495  ;;  %v712_v63 = vsel %vm270_vm1, %v1494_v58, 0.0 }
 0x49f   :  { %v709_v0 = vsel %vm270_vm1, %v1496_v61, 0.0 }
 0x4ab   :  { %v870_v46 = vpop.trf.xlu0 }
 0x4ac   :  { %v889_v47 = vrot.slane %v870_v46, %v1901_v62 }
 0x4ae   :  { %v890_v48 = vadd.f32 %v889_v47, %v850_v21  ;;  %v891_v49 = vadd.f32 %v889_v47, %v853_v38 }
 0x4b0   :  { %vm893_vm6 = vcmp.gt.f32.partialorder %v891_v49, 0.0  ;;  %v895_v50 = vmul.f32 0.2, %v891_v49  ;;  %vm892_vm7 = vcmp.gt.f32.partialorder %v890_v48, 0.0  ;;  %v894_v51 = vmul.f32 0.2, %v890_v48 }
 0x4b2   :  { %v897_v52 = vsel %vm893_vm6, %v891_v49, %v895_v50  ;;  %v896_v53 = vsel %vm892_vm7, %v890_v48, %v894_v51 }
 0x4b3   :  { %v899_v54 = vsel %vm538_vm3, %v897_v52, -1e+30  ;;  %v898_v56 = vsel %vm537_vm2, %v896_v53, -1e+30  ;;  %v1334_v52 = vld [vmem:[%s2029_s15] ss:$0 sm:$0xff] }
 0x4b4   :  { %v903_v59 = vsel %vm270_vm1, %v899_v54, -inf  ;;  %v900_v60 = vsel %vm270_vm1, %v898_v56, -inf }
 0x4b5   :  { %904 = vmax.xlane.f32.xlu0 %v903_v59  ;;  %901 = vmax.xlane.f32.xlu1 %v900_v60  ;;  %v1335_v60 = vld [vmem:[%s2030_s16] ss:$0 sm:$0xff] }
 0x4b9   :  { %713 = vadd.xlane.f32.xlu0 %v712_v63  ;;  %710 = vadd.xlane.f32.xlu1 %v709_v0 }
 0x53e   :  { %v905_v1 = vpop.xlane.xlu0 %904  ;;  %v902_v2 = vpop.xlane.xlu1 %901 }
 0x53f   :  { %v907_v3 = vsub.f32 %v899_v54, %v905_v1  ;;  %v906_v4 = vsub.f32 %v898_v56, %v902_v2 }
 0x541   :  { %v910_v5 = vmul.f32 1.442695, %v907_v3  ;;  %v908_v6 = vmul.f32 1.442695, %v906_v4 }
 0x542   :  { %v714_v7 = vpop.xlane.xlu0 %713  ;;  %v711_v8 = vpop.xlane.xlu1 %710 }
 0x543   :  { %1497 = vpow2.f32 %v910_v5 }
 0x544   :  { %1499 = vpow2.f32 %v908_v6 }
 0x545   :  { %1501 = vrcp.f32 %v714_v7 }
 0x546   :  { %1503 = vrcp.f32 %v711_v8 }
 0x550   :  { %v1498_v9 = vpop.eup %1497 }
 0x551   :  { %v1500_v10 = vpop.eup %1499  ;;  %v915_v11 = vsel %vm270_vm1, %v1498_v9, 0.0 }
 0x552   :  { %v1502_v12 = vpop.eup %1501  ;;  %916 = vadd.xlane.f32.xlu0 %v915_v11  ;;  %v912_v13 = vsel %vm270_vm1, %v1500_v10, 0.0 }
 0x553   :  { %v1504_v14 = vpop.eup %1503  ;;  %913 = vadd.xlane.f32.xlu1 %v912_v13  ;;  %v718_v15 = vmul.f32 %v1502_v12, %v1494_v58 }
 0x554   :  { %v716_v16 = vmul.f32 %v1504_v14, %v1496_v61 }
 0x556   :  { %1444 = vmatprep.mubr.msk.f32.mxu0 %vm270_vm1, %v716_v16 }
 0x557   :  { %1445 = vmatmul.mubr.msk.f32.vlgmr.msra.gmra.mxu0 %vm270_vm1, %v718_v15 }
 0x564   :  { %930 = vrot.lane.b32.xlu1 %v1885_v55, %s1698_s11  ;;  %v545_v55 = vld [vmem:[%s2027_s13] sm:$0x3] }
 0x565   :  { %v925_v40 = vrot.slane %v545_v55, %v1874_v39 }
 0x568   :  { %928 = vrot.lane.b32.xlu0 %v1888_v57, %s1698_s11  ;;  %v722_v57 = vrot.slane %v545_v55, %v1901_v62 }
 0x5db   :  { %v917_v17 = vpop.xlane.xlu0 %916 }
 0x5dc   :  { %1505 = vrcp.f32 %v917_v17  ;;  %v914_v18 = vpop.xlane.xlu1 %913 }
 0x5dd   :  { %1507 = vrcp.f32 %v914_v18 }
 0x5df   :  { %v929_v20 = vpop.permute.xlu0 %928 }
 0x5e0   :  { %v931_v19 = vpop.permute.xlu1 %930 }
 0x5e1   :  { %1447 = vmatprep.subr.mxu0 %v931_v19 }
 0x5e2   :  { %1448 = vmatpush3.msra.mxu0 %v931_v19 }
 0x5e3   :  { %1449 = vmatprep.subr.mxu0 %v929_v20 }
 0x5e4   :  { %1450 = vmatpush3.msra.mxu0 %v929_v20 }
 0x5e9   :  { %v1506_v21 = vpop.eup %1505 }
 0x5ea   :  { %v1508_v22 = vpop.eup %1507  ;;  %v921_v23 = vmul.f32 %v1506_v21, %v1498_v9 }
 0x5eb   :  { %v919_v24 = vmul.f32 %v1508_v22, %v1500_v10 }
 0x5ed   :  { %1451 = vmatprep.mubr.msk.f32.mxu0 %vm270_vm1, %v919_v24 }
 0x5ee   :  { %1452 = vmatmul.mubr.msk.f32.vlgmr.msra.gmra.mxu0 %vm270_vm1, %v921_v23 }
 0x617   :  { %v1446_v27 = vpop.f32.mrf.mxu0 }
 0x618   :  { %v801_v28 = vadd.f32 %v1446_v27, %v722_v57 }
 0x619   :  { %v795_v37 = vpop.f32.mrf.mxu0 }
 0x61a   :  { %v796_v46 = vadd.f32 %v795_v37, %v722_v57  ;;  %v805_v50 = vmax.f32 %v801_v28, 0.0 }
 0x61c   :  { %v804_v47 = vmax.f32 %v796_v46, 0.0 }
 0x6ae   :  { %v1453_v38 = vpop.f32.mrf.mxu0 }
 0x6af   :  { %v1012_v43 = vadd.f32 %v1453_v38, %v925_v40 }
 0x6b0   :  { %v1006_v41 = vpop.f32.mrf.mxu0 }
 0x6b1   :  { %v1007_v42 = vadd.f32 %v1006_v41, %v925_v40  ;;  %v1016_v45 = vmax.f32 %v1012_v43, 0.0 }
 0x6b3   :  { %v1015_v44 = vmax.f32 %v1007_v42, 0.0 }
 0x6b5   :  { %1019 = vrot.lane.b32.xlu1 %v1015_v44, %s1697_s20 }
 0x6b9   :  { %1021 = vrot.lane.b32.xlu1 %v1016_v45, %s1697_s20 }
 0x727   :  { %v1020_v48 = vpop.permute.xlu1 %1019 }
 0x728   :  { %v1025_v49 = vsel %vm175_vm0, %v804_v47, %v1020_v48 }
 0x729   :  { %1470 = vmatprep.mubr.msk.f32.mxu1 %vm1038_vm8, %v1025_v49 }
 0x72b   :  { %v1022_v51 = vpop.permute.xlu1 %1021 }
 0x72c   :  { %v1026_v39 = vsel %vm175_vm0, %v805_v50, %v1022_v51 }
 0x72d   :  { %1471 = vmatmul.mubr.msk.f32.vlgmr.msra.gmra.mxu1 %vm1038_vm8, %v1026_v39 }
 0x7ed   :  { %v1472_v53 = vpop.f32.mrf.mxu1 }
 0x7ee   :  { %1473 = vmatprep.subr.mxu0 %v1472_v53  ;;  %v1127_v54 = vmul.f32 %v1472_v53, %v1334_v52  ;;  %v1142_v1 = vmul.f32 %v1472_v53, %v1335_v60 }
 0x7ef   :  { %v1111_v56 = vpop.f32.mrf.mxu1  ;;  %1474 = vmatpush3.msra.mxu0 %v1472_v53 }
 0x7f0   :  { %1475 = vmatprep.subr.mxu0 %v1111_v56  ;;  %v1132_v58 = vsel %vm1128_vm9, %v1127_v54, 0.0  ;;  %v1126_v59 = vmul.f32 %v1334_v52, %v1111_v56  ;;  %v1141_v63 = vmul.f32 %v1335_v60, %v1111_v56  ;;  %v1146_v2 = vsel %vm1128_vm9, %v1142_v1, 0.0 }
 0x7f1   :  { %1133 = vadd.xlane.f32.xlu1 %v1132_v58  ;;  %1476 = vmatpush3.msra.mxu0 %v1111_v56 }
 0x7f2   :  { %v1129_v61 = vsel %vm1128_vm9, %v1126_v59, 0.0  ;;  %v1143_v0 = vsel %vm1128_vm9, %v1141_v63, 0.0 }
 0x7f3   :  { %1130 = vadd.xlane.f32.xlu0 %v1129_v61 }
 0x7f7   :  { %1144 = vadd.xlane.f32.xlu0 %v1143_v0 }
 0x7fb   :  { %1147 = vadd.xlane.f32.xlu0 %v1146_v2 }
 0x87a   :  { %v1134_v4 = vpop.xlane.xlu1 %1133 }
 0x87c   :  { %v1131_v3 = vpop.xlane.xlu0 %1130 }
 0x87d   :  { %1149 = vxpose.xlu1.b32.start [1/2] (short) (narrow) %v1131_v3, 8 }
 0x880   :  { %v1145_v5 = vpop.xlane.xlu0 %1144 }
 0x881   :  { %1150 = vxpose.xlu1.b32.end [2/2] (short) (narrow) %v1134_v4, 8 }
 0x884   :  { %v1148_v8 = vpop.xlane.xlu0 %1147 }
 0x8f9   :  { %v1165_v6 = vpop.trf.xlu1 }
 0x8fa   :  { %v1184_v7 = vrot.slane %v1165_v6, %v1901_v62 }
 0x8fc   :  { %v1185_v9 = vadd.f32 %v1184_v7, %v1145_v5  ;;  %v1186_v10 = vadd.f32 %v1184_v7, %v1148_v8 }
 0x8fe   :  { %vm1187_vm10 = vcmp.gt.f32.partialorder %v1185_v9, 0.0  ;;  %v1189_v11 = vmul.f32 0.2, %v1185_v9  ;;  %vm1188_vm11 = vcmp.gt.f32.partialorder %v1186_v10, 0.0  ;;  %v1190_v12 = vmul.f32 0.2, %v1186_v10 }
 0x900   :  { %v1191_v13 = vsel %vm1187_vm10, %v1185_v9, %v1189_v11  ;;  %v1192_v14 = vsel %vm1188_vm11, %v1186_v10, %v1190_v12 }
 0x901   :  { %v1193_v15 = vsel %vm537_vm2, %v1191_v13, -1e+30  ;;  %v1194_v17 = vsel %vm538_vm3, %v1192_v14, -1e+30 }
 0x902   :  { %v1195_v16 = vsel %vm270_vm1, %v1193_v15, -inf  ;;  %v1198_v62 = vsel %vm270_vm1, %v1194_v17, -inf }
 0x903   :  { %1196 = vmax.xlane.f32.xlu0 %v1195_v16 }
 0x907   :  { %1199 = vmax.xlane.f32.xlu0 %v1198_v62 }
 0x98c   :  { %v1197_v18 = vpop.xlane.xlu0 %1196 }
 0x98d   :  { %v1201_v19 = vsub.f32 %v1193_v15, %v1197_v18 }
 0x98f   :  { %v1203_v20 = vmul.f32 1.442695, %v1201_v19 }
 0x990   :  { %v1200_v21 = vpop.xlane.xlu0 %1199 }
 0x991   :  { %1509 = vpow2.f32 %v1203_v20  ;;  %v1202_v22 = vsub.f32 %v1194_v17, %v1200_v21 }
 0x993   :  { %v1205_v23 = vmul.f32 1.442695, %v1202_v22 }
 0x995   :  { %1511 = vpow2.f32 %v1205_v23 }
 0x99e   :  { %v1510_v24 = vpop.eup %1509 }
 0x99f   :  { %v1207_v25 = vsel %vm270_vm1, %v1510_v24, 0.0 }
 0x9a0   :  { %1208 = vadd.xlane.f32.xlu0 %v1207_v25 }
 0x9a2   :  { %v1512_v55 = vpop.eup %1511 }
 0x9a3   :  { %v1210_v57 = vsel %vm270_vm1, %v1512_v55, 0.0 }
 0x9a4   :  { %1211 = vadd.xlane.f32.xlu0 %v1210_v57 }
 0xa29   :  { %v1209_v26 = vpop.xlane.xlu0 %1208 }
 0xa2a   :  { %1513 = vrcp.f32 %v1209_v26 }
 0xa2d   :  { %v1212_v27 = vpop.xlane.xlu0 %1211 }
 0xa2e   :  { %1515 = vrcp.f32 %v1212_v27 }
 0xa37   :  { %v1514_v28 = vpop.eup %1513 }
 0xa38   :  { %v1214_v29 = vmul.f32 %v1514_v28, %v1510_v24 }
 0xa3a   :  { %1477 = vmatprep.mubr.msk.f32.mxu0 %vm270_vm1, %v1214_v29 }
 0xa3b   :  { %v1516_v30 = vpop.eup %1515 }
 0xa3c   :  { %v1216_v31 = vmul.f32 %v1516_v30, %v1512_v55 }
 0xa3e   :  { %1478 = vmatmul.mubr.msk.f32.vlgmr.msra.gmra.mxu0 %vm270_vm1, %v1216_v31 }
 0xafe   :  { %v1479_v33 = vpop.f32.mrf.mxu0 }
 0xaff   :  { %v1301_v34 = vadd.f32 %v1479_v33, %v1336_v32 }
 0xb00   :  { %v1295_v35 = vpop.f32.mrf.mxu0 }
 0xb01   :  { %1305 = vst.msk [vmem:[%s2032_s18 + $0x8] sm:$0xff] %vm1128_vm9, %v1301_v34  ;;  %v1296_v36 = vadd.f32 %v1336_v32, %v1295_v35 }
 0xb03   :  { %1304 = vst.msk [vmem:[%s2032_s18] sm:$0xff] %vm1128_vm9, %v1296_v36 }
 0xb04   :  { %1310 = vsyncpa [#allocation3], 1 }
 0xb05   :  { %1311 = vsyncpa [#allocation5], 1 }
 0xb06   :  { %1312 = vsyncpa [#allocation8], 1 }
 0xb07   :  { %1313 = vsyncpa [#allocation11], 1 }
 0xb08   :  { %1314 = vsyncpa [#allocation14], 1 }

</bundles_post_ra>
